<compile_context>
chip_gen: v7x
topology: tpu7x:2x2x1
jax: 0.10.0
libtpu: 0.0.40
codegen_flags: <defaults>
</compile_context>

<pallas_src>
import functools

import jax
import jax.numpy as jnp
import numpy as np
from jax.experimental import pallas as pl
from jax.experimental.pallas import tpu as pltpu


# ----------------------------------------------------------------------------
# Deterministic parameter init: emulate scipy.ndimage.gaussian_filter on a
# kernel_size x kernel_size delta image (mode='reflect', truncate=4.0).
# gaussian_filter is separable, so the 2D module weight is outer(v, v); the
# kernel below only needs the 1D factor v.
# ----------------------------------------------------------------------------
def _reflect_index(i, n):
    # scipy 'reflect' mode: (d c b a | a b c d | d c b a)
    if n == 1:
        return 0
    period = 2 * n
    i = i % period
    if i < 0:
        i += period
    if i >= n:
        i = period - 1 - i
    return i


def _gaussian_1d(kernel_size):
    sigma = 0.3 * ((kernel_size - 1) * 0.5 - 1) + 0.8
    radius = int(4.0 * sigma + 0.5)
    x = np.arange(-radius, radius + 1, dtype=np.float64)
    w = np.exp(-0.5 * (x / sigma) ** 2)
    w = w / w.sum()

    k = kernel_size
    center = k // 2
    delta = np.zeros(k, dtype=np.float64)
    delta[center] = 1.0
    v = np.zeros(k, dtype=np.float64)
    for i in range(k):
        acc = 0.0
        for j in range(2 * radius + 1):
            acc += w[j] * delta[_reflect_index(i + j - radius, k)]
        v[i] = acc
    return v.astype(np.float32)


# ----------------------------------------------------------------------------
# Pallas kernel: a chunk of B independent planes, fused reflection pad +
# separable Gaussian blur with constant taps.
# ----------------------------------------------------------------------------
def _blur_kernel(x_ref, o_ref, padx_ref, rowp_ref, *, v, K, p, H, W):
    # x_ref   : (B, H, W)        input planes                 (VMEM, I/O dtype)
    # o_ref   : (B, H, W)        blurred output planes        (VMEM, I/O dtype)
    # padx_ref: (B, H, W + 2p)   f32 scratch: horizontally reflection-padded x
    # rowp_ref: (B, H + 2p, W)   f32 scratch: vertically padded row-pass result

    # ---- horizontal ReflectionPad (columns), all sourced from x_ref ----
    padx_ref[:, :, p:p + W] = x_ref[...].astype(jnp.float32)
    for d in range(1, p + 1):  # left / right reflected columns (no RAW chain)
        padx_ref[:, :, p - d:p - d + 1] = x_ref[:, :, d:d + 1].astype(jnp.float32)
        padx_ref[:, :, p + W - 1 + d:p + W + d] = (
            x_ref[:, :, W - 1 - d:W - d].astype(jnp.float32))

    # ---- horizontal pass: each tap is a shifted load from the scratch ----
    # Taps v[j] are compile-time Python floats -> scalar-immediate multiplies.
    # Accumulation stays in registers; single store per pass (v5e: 1 vst slot).
    row = v[0] * padx_ref[:, :, pl.ds(0, W)]
    for j in range(1, K):
        row = row + v[j] * padx_ref[:, :, pl.ds(j, W)]           # (B, H, W) f32

    # ---- vertical ReflectionPad (rows), sourced from the live `row` value ----
    rowp_ref[:, p:p + H, :] = row
    for d in range(1, p + 1):
        rowp_ref[:, p - d:p - d + 1, :] = row[:, d:d + 1, :]
        rowp_ref[:, p + H - 1 + d:p + H + d, :] = row[:, H - 1 - d:H - d, :]

    # ---- vertical pass: sublane-offset loads from the scratch ----
    out = v[0] * rowp_ref[:, pl.ds(0, H), :]
    for i in range(1, K):
        out = out + v[i] * rowp_ref[:, pl.ds(i, H), :]           # (B, H, W) f32

    # TODO(synk): for kernel_size >= ~9, express each 1D pass as an MXU matmul
    # against a banded tap matrix instead of the VALU tap loops above.
    o_ref[...] = out.astype(o_ref.dtype)


def gaussian_blur(x, kernel_size):
    """x: (N, C, H, W) float -> (N, C, H, W), GaussianBlurLayer.forward."""
    N, C, H, W = x.shape
    K = int(kernel_size)
    assert K % 2 == 1
    p = K // 2
    # Same constraint as nn.ReflectionPad2d: pad must be smaller than the dims.
    assert p < H and p < W, "reflection pad requires kernel_size//2 < min(H, W)"
    Hp, Wp = H + 2 * p, W + 2 * p

    # Compile-time constant taps (same Gaussian for every channel, exactly as
    # the module's _init_kernel copies one kernel to all channels).
    v = tuple(float(t) for t in _gaussian_1d(K))

    # All (n, c) planes are independent and use the same taps: flatten them
    # and fold as many planes per grid step as the VMEM budget allows.
    NC = N * C
    x3 = x.reshape(NC, H, W)

    # ---- per-plane VMEM accounting: every live buffer and register temp ----
    io_itemsize = int(jnp.dtype(x.dtype).itemsize)
    bytes_per_plane = (
        2 * H * W * io_itemsize      # input block  (double-buffered)
        + 2 * H * W * io_itemsize    # output block (double-buffered)
        + 4 * H * Wp                 # padx scratch (f32)
        + 4 * Hp * W                 # rowp scratch (f32)
        + 4 * H * W                  # `row` register temp (f32)
        + 4 * H * W                  # `out` register temp (f32)
    )

    # ---- chip-aware block-size budget (v5e/v6e: 128 MiB VMEM, v7x: 64 MiB) ----
    try:
        vmem_cap = int(pltpu.get_tpu_info().vmem_capacity_bytes)
    except Exception:
        vmem_cap = 64 * 1024 * 1024              # conservative v7x per-TC value
    budget = min(int(0.70 * vmem_cap), 64 * 1024 * 1024)
    vmem_limit = max(32 * 1024 * 1024,
                     min(vmem_cap - (8 << 20), budget + (32 << 20)))

    bblk = int(max(1, min(NC, budget // max(1, bytes_per_plane))))
    # Guarantee >=2 (target 4) pipelined grid steps: engages the double buffer
    # and lets v7x shard the "parallel" axis across its two TensorCores.
    min_steps = min(NC, 4)
    if min_steps > 1:
        bblk = min(bblk, pl.cdiv(NC, min_steps))
    grid = (pl.cdiv(NC, bblk),)
    # TODO(synk): for planes with bytes_per_plane > budget, add row-strip
    # tiling (strip height multiple of 8, +/-p halo) instead of 1 plane/step.
    # TODO(synk): for W far below 128 a lane-dense repack (planes on lanes)
    # would remove masked stores, at the cost of a wrapper-side transpose pass.

    kernel = functools.partial(_blur_kernel, v=v, K=K, p=p, H=H, W=W)

    out3 = pl.pallas_call(
        kernel,
        out_shape=jax.ShapeDtypeStruct((NC, H, W), x.dtype),
        grid_spec=pltpu.PrefetchScalarGridSpec(
            num_scalar_prefetch=0,
            grid=grid,
            in_specs=[pl.BlockSpec((bblk, H, W), lambda i: (i, 0, 0))],
            out_specs=pl.BlockSpec((bblk, H, W), lambda i: (i, 0, 0)),
            scratch_shapes=[
                pltpu.VMEM((bblk, H, Wp), jnp.float32),   # padded input
                pltpu.VMEM((bblk, Hp, W), jnp.float32),   # padded row pass
            ],
        ),
        compiler_params=pltpu.CompilerParams(
            dimension_semantics=("parallel",),
            vmem_limit_bytes=int(vmem_limit),
        ),
    )(x3)
    return out3.reshape(N, C, H, W)


# ----------------------------------------------------------------------------
# Pure-JAX reference (reflection pad + grouped conv) for a correctness check.
# ----------------------------------------------------------------------------
def _reference(x, kernel_size):
    N, C, H, W = x.shape
    K = int(kernel_size)
    p = K // 2
    v = _gaussian_1d(K)
    kern2d = np.outer(v, v).astype(np.float32)                       # (K, K)
    weight = jnp.asarray(np.broadcast_to(kern2d, (C, 1, K, K)).copy())
    xpad = jnp.pad(x, ((0, 0), (0, 0), (p, p), (p, p)), mode="reflect")
    return jax.lax.conv_general_dilated(
        xpad, weight, window_strides=(1, 1), padding="VALID",
        dimension_numbers=("NCHW", "OIHW", "NCHW"),
        feature_group_count=C)


if __name__ == "__main__":
    channels, kernel_size = 4, 3
    N, H, W = 2, 16, 16

    key = jax.random.PRNGKey(0)
    x = jax.random.normal(key, (N, channels, H, W), dtype=jnp.float32)

    out = gaussian_blur(x, kernel_size)
    out = jax.block_until_ready(out)

    ref = jax.block_until_ready(_reference(x, kernel_size))
    assert out.shape == (N, channels, H, W)
    assert jnp.allclose(out, ref, atol=1e-5, rtol=1e-5)

    print("KERNEL_OK")
</pallas_src>

<mosaic_0001>
module attributes {stable_mosaic.version = 11 : i64} {
  func.func @_blur_kernel(%arg0: i32, %arg1: memref<2x16x16xf32, #tpu.memory_space<vmem>>, %arg2: memref<2x16x16xf32, #tpu.memory_space<vmem>>, %arg3: memref<2x16x18xf32, #tpu.memory_space<vmem>>, %arg4: memref<2x18x16xf32, #tpu.memory_space<vmem>>) attributes {dimension_semantics = [#tpu.dimension_semantics<parallel>], iteration_bounds = array<i64: 4>, scalar_prefetch = 0 : i64, scratch_operands = 2 : i64, tpu.core_type = #tpu.core_type<tc>, window_params = [{transform_indices = @transform_0, window_bounds = array<i64: 2, 16, 16>}, {transform_indices = @transform_1, window_bounds = array<i64: 2, 16, 16>}]} {
    %c0 = arith.constant 0 : index
    %c0_0 = arith.constant 0 : index
    %c0_1 = arith.constant 0 : index
    %0 = vector.load %arg1[%c0, %c0_0, %c0_1] : memref<2x16x16xf32, #tpu.memory_space<vmem>>, vector<2x16x16xf32>
    %c0_2 = arith.constant 0 : index
    %c0_3 = arith.constant 0 : index
    %c1 = arith.constant 1 : index
    %1 = vector.load %arg3[%c0_2, %c0_3, %c1] : memref<2x16x18xf32, #tpu.memory_space<vmem>>, vector<2x16x16xf32>
    tpu.vector_store %arg3[%c0_2, %c0_3, %c1], %0 {strides = array<i32>} : memref<2x16x18xf32, #tpu.memory_space<vmem>>, vector<2x16x16xf32>,
    %c0_4 = arith.constant 0 : index
    %c0_5 = arith.constant 0 : index
    %c1_6 = arith.constant 1 : index
    %2 = vector.load %arg1[%c0_4, %c0_5, %c1_6] : memref<2x16x16xf32, #tpu.memory_space<vmem>>, vector<2x16x1xf32>
    %c0_7 = arith.constant 0 : index
    %c0_8 = arith.constant 0 : index
    %c0_9 = arith.constant 0 : index
    %3 = vector.load %arg3[%c0_7, %c0_8, %c0_9] : memref<2x16x18xf32, #tpu.memory_space<vmem>>, vector<2x16x1xf32>
    tpu.vector_store %arg3[%c0_7, %c0_8, %c0_9], %2 {strides = array<i32>} : memref<2x16x18xf32, #tpu.memory_space<vmem>>, vector<2x16x1xf32>,
    %c0_10 = arith.constant 0 : index
    %c0_11 = arith.constant 0 : index
    %c14 = arith.constant 14 : index
    %4 = vector.load %arg1[%c0_10, %c0_11, %c14] : memref<2x16x16xf32, #tpu.memory_space<vmem>>, vector<2x16x1xf32>
    %c0_12 = arith.constant 0 : index
    %c0_13 = arith.constant 0 : index
    %c17 = arith.constant 17 : index
    %5 = vector.load %arg3[%c0_12, %c0_13, %c17] : memref<2x16x18xf32, #tpu.memory_space<vmem>>, vector<2x16x1xf32>
    tpu.vector_store %arg3[%c0_12, %c0_13, %c17], %4 {strides = array<i32>} : memref<2x16x18xf32, #tpu.memory_space<vmem>>, vector<2x16x1xf32>,
    %c0_14 = arith.constant 0 : index
    %c0_15 = arith.constant 0 : index
    %c0_16 = arith.constant 0 : index
    %6 = vector.load %arg3[%c0_14, %c0_15, %c0_16] : memref<2x16x18xf32, #tpu.memory_space<vmem>>, vector<2x16x16xf32>
    %cst = arith.constant 0.250221044 : f32
    %7 = vector.broadcast %cst : f32 to vector<2x16x16xf32>
    %8 = arith.mulf %7, %6 : vector<2x16x16xf32>
    %c0_17 = arith.constant 0 : index
    %c0_18 = arith.constant 0 : index
    %c1_19 = arith.constant 1 : index
    %9 = vector.load %arg3[%c0_17, %c0_18, %c1_19] : memref<2x16x18xf32, #tpu.memory_space<vmem>>, vector<2x16x16xf32>
    %cst_20 = arith.constant 0.499557942 : f32
    %10 = vector.broadcast %cst_20 : f32 to vector<2x16x16xf32>
    %11 = arith.mulf %10, %9 : vector<2x16x16xf32>
    %12 = arith.addf %8, %11 : vector<2x16x16xf32>
    %c0_21 = arith.constant 0 : index
    %c0_22 = arith.constant 0 : index
    %c2 = arith.constant 2 : index
    %13 = vector.load %arg3[%c0_21, %c0_22, %c2] : memref<2x16x18xf32, #tpu.memory_space<vmem>>, vector<2x16x16xf32>
    %cst_23 = arith.constant 0.250221044 : f32
    %14 = vector.broadcast %cst_23 : f32 to vector<2x16x16xf32>
    %15 = arith.mulf %14, %13 : vector<2x16x16xf32>
    %16 = arith.addf %12, %15 : vector<2x16x16xf32>
    %c0_24 = arith.constant 0 : index
    %c1_25 = arith.constant 1 : index
    %c0_26 = arith.constant 0 : index
    %17 = vector.load %arg4[%c0_24, %c1_25, %c0_26] : memref<2x18x16xf32, #tpu.memory_space<vmem>>, vector<2x16x16xf32>
    tpu.vector_store %arg4[%c0_24, %c1_25, %c0_26], %16 {strides = array<i32>} : memref<2x18x16xf32, #tpu.memory_space<vmem>>, vector<2x16x16xf32>,
    %18 = vector.extract_strided_slice %16 {offsets = [0, 1, 0], sizes = [2, 1, 16], strides = [1, 1, 1]} : vector<2x16x16xf32> to vector<2x1x16xf32>
    %c0_27 = arith.constant 0 : index
    %c0_28 = arith.constant 0 : index
    %c0_29 = arith.constant 0 : index
    %19 = vector.load %arg4[%c0_27, %c0_28, %c0_29] : memref<2x18x16xf32, #tpu.memory_space<vmem>>, vector<2x1x16xf32>
    tpu.vector_store %arg4[%c0_27, %c0_28, %c0_29], %18 {strides = array<i32>} : memref<2x18x16xf32, #tpu.memory_space<vmem>>, vector<2x1x16xf32>,
    %20 = vector.extract_strided_slice %16 {offsets = [0, 14, 0], sizes = [2, 1, 16], strides = [1, 1, 1]} : vector<2x16x16xf32> to vector<2x1x16xf32>
    %c0_30 = arith.constant 0 : index
    %c17_31 = arith.constant 17 : index
    %c0_32 = arith.constant 0 : index
    %21 = vector.load %arg4[%c0_30, %c17_31, %c0_32] : memref<2x18x16xf32, #tpu.memory_space<vmem>>, vector<2x1x16xf32>
    tpu.vector_store %arg4[%c0_30, %c17_31, %c0_32], %20 {strides = array<i32>} : memref<2x18x16xf32, #tpu.memory_space<vmem>>, vector<2x1x16xf32>,
    %c0_33 = arith.constant 0 : index
    %c0_34 = arith.constant 0 : index
    %c0_35 = arith.constant 0 : index
    %22 = vector.load %arg4[%c0_33, %c0_34, %c0_35] : memref<2x18x16xf32, #tpu.memory_space<vmem>>, vector<2x16x16xf32>
    %cst_36 = arith.constant 0.250221044 : f32
    %23 = vector.broadcast %cst_36 : f32 to vector<2x16x16xf32>
    %24 = arith.mulf %23, %22 : vector<2x16x16xf32>
    %c0_37 = arith.constant 0 : index
    %c1_38 = arith.constant 1 : index
    %c0_39 = arith.constant 0 : index
    %25 = vector.load %arg4[%c0_37, %c1_38, %c0_39] : memref<2x18x16xf32, #tpu.memory_space<vmem>>, vector<2x16x16xf32>
    %cst_40 = arith.constant 0.499557942 : f32
    %26 = vector.broadcast %cst_40 : f32 to vector<2x16x16xf32>
    %27 = arith.mulf %26, %25 : vector<2x16x16xf32>
    %28 = arith.addf %24, %27 : vector<2x16x16xf32>
    %c0_41 = arith.constant 0 : index
    %c2_42 = arith.constant 2 : index
    %c0_43 = arith.constant 0 : index
    %29 = vector.load %arg4[%c0_41, %c2_42, %c0_43] : memref<2x18x16xf32, #tpu.memory_space<vmem>>, vector<2x16x16xf32>
    %cst_44 = arith.constant 0.250221044 : f32
    %30 = vector.broadcast %cst_44 : f32 to vector<2x16x16xf32>
    %31 = arith.mulf %30, %29 : vector<2x16x16xf32>
    %32 = arith.addf %28, %31 : vector<2x16x16xf32>
    %c0_45 = arith.constant 0 : index
    %c0_46 = arith.constant 0 : index
    %c0_47 = arith.constant 0 : index
    %33 = vector.load %arg2[%c0_45, %c0_46, %c0_47] : memref<2x16x16xf32, #tpu.memory_space<vmem>>, vector<2x16x16xf32>
    tpu.vector_store %arg2[%c0_45, %c0_46, %c0_47], %32 {strides = array<i32>} : memref<2x16x16xf32, #tpu.memory_space<vmem>>, vector<2x16x16xf32>,
    return
  }
  func.func @transform_0(%arg0: i32) -> (i32, i32, i32) {
    %c0_i32 = arith.constant 0 : i32
    %c0_i32_0 = arith.constant 0 : i32
    %c0_i32_1 = arith.constant 0 : i32
    return %arg0, %c0_i32, %c0_i32_0 : i32, i32, i32
  }
  func.func @transform_1(%arg0: i32) -> (i32, i32, i32) {
    %c0_i32 = arith.constant 0 : i32
    %c0_i32_0 = arith.constant 0 : i32
    %c0_i32_1 = arith.constant 0 : i32
    return %arg0, %c0_i32, %c0_i32_0 : i32, i32, i32
  }
}

</mosaic_0001>

<bundles_post_ra>
// kernel: tpu_custom_call.1
= control target key start
LH: loop header
LB: loop body
LE: loop exit
PB: predicated region body
PF: predicated region fallthrough
CT: control target
= control target key end

     0   :  { %6 = vsyncpa [#allocation5], 0  ;;  %s776_s0 = inlined_call_operand.hbm [shape: f32[8,16,16], index: 0, kind: input, shape index: {}]   ;;  %s777_s1 = inlined_call_operand.hbm [shape: f32[8,16,16], index: 1, kind: output, shape index: {}]  }
   0x1   :  { %8 = vsyncpa [#allocation5 + $0x1], 0 }
   0x2   :  { %9 = vsyncpa [#allocation6], 0 }
   0x3   :  { %11 = vsyncpa [#allocation6 + $0x1], 0  ;;  %s592_s6 = smov 0   ;;  %s594_s7 = smov 0  }
   0x4   :  { %s596_s8 = smov 0   ;;  %s598_s9 = smov 0  }
   0x5 LB: > { %s613_s10 = sadd.s32 4294967295, %s570_s9   ;;  %s400_s11 = sadd.s32 4294967294, %s570_s9   ;;  %s570_s9 = sphi %s598_s9, %s789_s9   ;;  %s566_s8 = sphi %s596_s8, %s788_s8   ;;  %s562_s7 = sphi %s594_s7, %s787_s7   ;;  %s558_s6 = sphi %s592_s6, %s786_s6  }
   0x6   : > { %s617_s12 = sadd.s32 1, %s570_s9   ;;  %s24_s13 = sadd.s32 1, %s566_s8 }
   0x7   : > { %s21_s14 = ssub.s32 %s570_s9, %s617_s12  ;;  %p31_p0 = scmp.ne.s32.totalorder %s566_s8, %s562_s7 }
   0x8   : > { %p22_p1 = scmp.eq.s32.totalorder %s21_s14, 0  ;;  %p32_p2 = scmp.eq.s32.totalorder %s570_s9, 0 }
   0x9   : > { %p37_p3 = scmp.ne.s32.totalorder %s562_s7, %s558_s6  ;;  %p38_p4 = scmp.eq.s32.totalorder %s613_s10, 0 }
   0xa   : > { %s629_s15 = scalar_select %p22_p1, %s566_s8, %s24_s13  }
   0xb   : > { %p631_p5 = por %p32_p2, %p31_p0  ;;  %p635_p6 = por %p38_p4, %p37_p3 }
   0xc   : > { %p61_p7 = scmp.eq.s32.totalorder %s613_s10, 3  ;;  %p67_p8 = scmp.eq.s32.totalorder %s400_s11, 3 }
   0xd   : > { %p432_p9 = scmp.lt.s32.totalorder %s570_s9, 4  ;;  %s87_s20 = sand.u32 1, %s566_s8  }
   0xe   : > { %p641_p10 = por %p61_p7, %p31_p0  ;;  %p645_p11 = por %p67_p8, %p37_p3 }
   0xf   : > { %s417_s21 = sshll.u32 %s570_s9, 9  ;;  %s403_s22 = sshll.u32 %s87_s20, 5 }
  0x10   : > { %s781_s18 = scalar_select %p641_p10, 1, 0 }
  0x11   : > { %s782_s19 = scalar_select %p645_p11, 1, 0 }
  0x12   : > { %s654_s25 = scalar_lea.hbm %s776_s0, %s417_s21  ;;  %s91_s26 = scalar_lea.vmem [#allocation4], %s403_s22 }
  0x13   : > { %s99_s27 = sshll.u32 %s91_s26, 4  ;;  %p658_p12 = pnand %p432_p9, %p631_p5  ;;  %s662_s27 = int_to_ptr.vmem [resolvable:$true] %s99_s27 }
  0x14   : > { %s664_s29 = scalar_lea.sflag [#allocation5], %s87_s20  ;;  %s474_s30 = scalar_lea.hbm %s654_s25, 512 }
  0x15   : > { %p475_p13 = scmp.ne.s32.totalorder %s654_s25, %s474_s30  ;;  %p476_p0 = pneg %p658_p12 }
  0x16   : > { %s479_s4 = scalar_lea.hbm %s776_s0, 2048  ;;  %p480_p3 = scmp.lt.u32.totalorder %s654_s25, %s776_s0 }
  0x17   : > { %p477_p1 = pnand %p476_p0, %p475_p13  ;;  %p481_p4 = scmp.lt.u32.totalorder %s479_s4, %s474_s30 }
  0x18   : > { %p483_p7 = scmp.lt.u32.totalorder %s474_s30, %s654_s25 }
  0x19   : > { %p478_p2 = pneg %p477_p1  ;;  %p482_p5 = por %p481_p4, %p480_p3 }
  0x1b   : > { %p484_p8 = por %p483_p7, %p482_p5 }
  0x1d   : > { %p485_p9 = pnand %p484_p8, %p478_p2 }
  0x1f   : > { %488 = shalt.err (!%p485_p9)
}
  0x20   : > { %s489_s13 = scalar_lea.vmem %s662_s27, 512  ;;  %s572_s14 = smov [#allocation4]  }
  0x21   : > { %p490_p13 = scmp.ne.s32.totalorder %s662_s27, %s489_s13  ;;  %s494_s16 = sshll.u32 %s572_s14, 4  ;;  %s495_s16 = int_to_ptr.vmem [resolvable:$false] %s494_s16 }
  0x22   : > { %s496_s20 = scalar_lea.vmem %s495_s16, 1024  ;;  %p497_p10 = scmp.lt.s32.totalorder %s662_s27, %s495_s16 }
  0x23   : > { %p492_p1 = pnand %p490_p13, %p476_p0  ;;  %p498_p3 = scmp.lt.s32.totalorder %s496_s20, %s489_s13 }
  0x25   : > { %p493_p11 = pneg %p492_p1  ;;  %p499_p4 = por %p498_p3, %p497_p10 }
  0x27   : > { %p500_p5 = pnand %p499_p4, %p493_p11 }
  0x29   : > { %503 = shalt.err (!%p500_p5)
}
  0x2a   : > { %s573_s21 = smov 128   ;;  %s574_s22 = smov 8  }
  0x2b   : > { %427 = dma.hbm_to_vmem [thread:$0]  (!%p658_p12), %s654_s25, 512, %s662_s27, %s664_s29, %s573_s21, %s573_s21, %s574_s22  }
  0x2c   : > { %p407_p0 = scmp.ge.s32.totalorder %s570_s9, 1  ;;  %p107_p2 = scmp.lt.s32.totalorder %s570_s9, 5 }
  0x2e   : > { %p108_p7 = pnand %p407_p0, %p107_p2 }
  0x2f   : > { %s695_s23 = sand.u32 (!%p108_p7), 1, %s562_s7  }
  0x30   : > { %111 = sbr.rel (%p108_p7) target bundleno = 358 (0x166), region = 24  ;;  %s408_s24 = sshll.u32 (!%p108_p7), %s695_s23, 5 }
  0x31   : > { %s114_s26 = scalar_lea.sflag (!%p108_p7), [#allocation5], %s695_s23  ;;  %s117_s30 = scalar_lea.vmem (!%p108_p7), [#allocation4], %s408_s24 }
  0x37   : > { %549 = dma.done.wait (%p635_p6), %s114_s26, 512  }
  0x38   : > { %551 = vsyncadd (%p635_p6), %s114_s26, 4294966784  ;;  %v140_v0 = vld [vmem:[%s117_s30 + $0x10] sm:$0xff]  ;;  %v138_v1 = vld [vmem:[%s117_s30] sm:$0xff]  ;;  %s575_s25 = smov 1   ;;  %s576_s27 = smov 127   ;;  %vm158_vm0 = vcmask 138248  }
  0x39   : > { %150 = vrot.lane.b32.xlu1 %v140_v0, %s575_s25  ;;  %146 = vrot.lane.b32.xlu0 %v138_v1, %s575_s25  ;;  %v141_v2 = vld [vmem:[%s117_s30 + $0x18] sm:$0xff]  ;;  %v139_v3 = vld [vmem:[%s117_s30 + $0x8] sm:$0xff]  ;;  %s577_s17 = smov 3   ;;  %vm183_vm1 = vcmask 7168   ;;  %vm208_vm2 = vcmask 146568   ;;  %s578_s28 = smov 126  }
  0x3a   : > { %vm265_vm3 = vcmask 130048   ;;  %vm273_vm4 = vcmask 129030   ;;  %vm270_vm5 = vcmask 123905   ;;  %s419_s29 = sshll.u32 %s613_s10, 9  ;;  %s135_s2 = scalar_lea.vmem [#allocation7], %s408_s24 }
  0x3b   : > { %s327_s3 = sshll.u32 %s135_s2, 4  ;;  %s729_s5 = scalar_lea.hbm %s777_s1, %s419_s29  ;;  %s731_s3 = int_to_ptr.vmem [resolvable:$true] %s327_s3 }
  0x3c   : > { %s313_s11 = scalar_lea.sflag [#allocation6], %s695_s23  ;;  %s504_s13 = scalar_lea.vmem %s731_s3, 512 }
  0x3d   : > { %152 = vrot.lane.b32.xlu1 %v141_v2, %s575_s25  ;;  %148 = vrot.lane.b32.xlu0 %v139_v3, %s575_s25  ;;  %p505_p6 = scmp.ne.s32.totalorder %s731_s3, %s504_s13  ;;  %p784_p10 = scmp.ne.s32.totalorder %s781_s18, 0 }
  0x3e   : > { %s579_s14 = smov [#allocation7]  }
  0x3f   : > { %p506_p11 = pnand %p505_p6, %p784_p10  ;;  %s508_s16 = sshll.u32 %s579_s14, 4  ;;  %s509_s16 = int_to_ptr.vmem [resolvable:$false] %s508_s16 }
  0x40   : > { %s510_s20 = scalar_lea.vmem %s509_s16, 1024  ;;  %p511_p8 = scmp.lt.s32.totalorder %s731_s3, %s509_s16 }
  0x41   : > { %173 = vrot.lane.b32.xlu1 %v139_v3, %s576_s27  ;;  %171 = vrot.lane.b32.xlu0 %v138_v1, %s576_s27  ;;  %p507_p12 = pneg %p506_p11  ;;  %p512_p9 = scmp.lt.s32.totalorder %s510_s20, %s504_s13 }
  0x43   : > { %p513_p13 = por %p512_p9, %p511_p8 }
  0x45   : > { %177 = vrot.lane.b32.xlu1 %v141_v2, %s576_s27  ;;  %175 = vrot.lane.b32.xlu0 %v140_v0, %s576_s27  ;;  %p514_p1 = pnand %p513_p13, %p507_p12 }
  0x49   : > { %198 = vrot.lane.b32.xlu1 %v139_v3, %s577_s17  ;;  %196 = vrot.lane.b32.xlu0 %v138_v1, %s577_s17 }
  0x4d   : > { %202 = vrot.lane.b32.xlu1 %v141_v2, %s577_s17  ;;  %200 = vrot.lane.b32.xlu0 %v140_v0, %s577_s17 }
  0xab   : > { %v151_v4 = vpop.permute.xlu1 %150  ;;  %v147_v5 = vpop.permute.xlu0 %146 }
  0xac   : > { %161 = vst.msk [vmem:[#allocation2 + $0x10] sm:$0xff] %vm158_vm0, %v151_v4  ;;  %159 = vst.msk [vmem:[#allocation2] sm:$0xff] %vm158_vm0, %v147_v5 }
  0xaf   : > { %v153_v6 = vpop.permute.xlu1 %152  ;;  %v149_v7 = vpop.permute.xlu0 %148 }
  0xb0   : > { %162 = vst.msk [vmem:[#allocation2 + $0x18] sm:$0xff] %vm158_vm0, %v153_v6  ;;  %160 = vst.msk [vmem:[#allocation2 + $0x8] sm:$0xff] %vm158_vm0, %v149_v7 }
  0xb3   : > { %v174_v8 = vpop.permute.xlu1 %173  ;;  %v172_v9 = vpop.permute.xlu0 %171 }
  0xb4   : > { %185 = vst.msk [vmem:[#allocation2 + $0x8] sm:$0xff] %vm183_vm1, %v174_v8  ;;  %184 = vst.msk [vmem:[#allocation2] sm:$0xff] %vm183_vm1, %v172_v9 }
  0xb7   : > { %v178_v10 = vpop.permute.xlu1 %177  ;;  %v176_v11 = vpop.permute.xlu0 %175 }
  0xb8   : > { %187 = vst.msk [vmem:[#allocation2 + $0x18] sm:$0xff] %vm183_vm1, %v178_v10  ;;  %186 = vst.msk [vmem:[#allocation2 + $0x10] sm:$0xff] %vm183_vm1, %v176_v11 }
  0xbb   : > { %v199_v12 = vpop.permute.xlu1 %198  ;;  %v197_v13 = vpop.permute.xlu0 %196 }
  0xbc   : > { %210 = vst.msk [vmem:[#allocation2 + $0x8] sm:$0xff] %vm208_vm2, %v199_v12  ;;  %209 = vst.msk [vmem:[#allocation2] sm:$0xff] %vm208_vm2, %v197_v13 }
  0xbf   : > { %v203_v14 = vpop.permute.xlu1 %202  ;;  %v201_v15 = vpop.permute.xlu0 %200 }
  0xc0   : > { %212 = vst.msk [vmem:[#allocation2 + $0x18] sm:$0xff] %vm208_vm2, %v203_v14  ;;  %211 = vst.msk [vmem:[#allocation2 + $0x10] sm:$0xff] %vm208_vm2, %v201_v15 }
  0xc3   : > { %v214_v16 = vld [vmem:[#allocation2 + $0x8] sm:$0xff]  ;;  %v213_v17 = vld [vmem:[#allocation2] sm:$0xff] }
  0xc4   : > { %v222_v18 = vmul.f32 0.49955794, %v214_v16  ;;  %v221_v19 = vmul.f32 0.49955794, %v213_v17  ;;  %v218_v24 = vmul.f32 0.25022104, %v214_v16 }
  0xc5   : > { %v217_v25 = vmul.f32 0.25022104, %v213_v17 }
  0xc6   : > { %231 = vrot.lane.b32.xlu1 %v222_v18, %s576_s27  ;;  %229 = vrot.lane.b32.xlu0 %v221_v19, %s576_s27 }
  0xc7   : > { %v216_v20 = vld [vmem:[#allocation2 + $0x18] sm:$0xff]  ;;  %v215_v21 = vld [vmem:[#allocation2 + $0x10] sm:$0xff] }
  0xc8   : > { %v224_v22 = vmul.f32 0.49955794, %v216_v20  ;;  %v223_v23 = vmul.f32 0.49955794, %v215_v21  ;;  %v220_v26 = vmul.f32 0.25022104, %v216_v20 }
  0xc9   : > { %v219_v27 = vmul.f32 0.25022104, %v215_v21 }
  0xca   : > { %235 = vrot.lane.b32.xlu1 %v224_v22, %s576_s27  ;;  %233 = vrot.lane.b32.xlu0 %v223_v23, %s576_s27 }
  0xce   : > { %251 = vrot.lane.b32.xlu1 %v218_v24, %s578_s28  ;;  %249 = vrot.lane.b32.xlu0 %v217_v25, %s578_s28 }
  0xd2   : > { %255 = vrot.lane.b32.xlu1 %v220_v26, %s578_s28  ;;  %253 = vrot.lane.b32.xlu0 %v219_v27, %s578_s28 }
 0x138   : > { %v232_v28 = vpop.permute.xlu1 %231  ;;  %v230_v29 = vpop.permute.xlu0 %229 }
 0x139   : > { %v242_v32 = vadd.f32 %v232_v28, %v218_v24  ;;  %v241_v33 = vadd.f32 %v230_v29, %v217_v25 }
 0x13c   : > { %v236_v30 = vpop.permute.xlu1 %235  ;;  %v234_v31 = vpop.permute.xlu0 %233 }
 0x13d   : > { %v244_v38 = vadd.f32 %v236_v30, %v220_v26  ;;  %v243_v39 = vadd.f32 %v234_v31, %v219_v27 }
 0x140   : > { %v252_v34 = vpop.permute.xlu1 %251  ;;  %v250_v35 = vpop.permute.xlu0 %249 }
 0x141   : > { %v262_v36 = vadd.f32 %v252_v34, %v242_v32  ;;  %v261_v37 = vadd.f32 %v250_v35, %v241_v33 }
 0x143   : > { %267 = vst.msk [vmem:[#allocation3 + $0x9] sm:$0xff] %vm265_vm3, %v262_v36  ;;  %266 = vst.msk [vmem:[#allocation3 + $0x1] sm:$0xff] %vm265_vm3, %v261_v37 }
 0x144   : > { %274 = vst.msk [vmem:[#allocation3 + $0xb] sm:$0x40] %vm273_vm4, %v262_v36  ;;  %v256_v40 = vpop.permute.xlu1 %255  ;;  %v254_v41 = vpop.permute.xlu0 %253 }
 0x145   : > { %271 = vst.msk [vmem:[#allocation3 - $0x1] sm:$0x2] %vm270_vm5, %v261_v37  ;;  %v264_v42 = vadd.f32 %v256_v40, %v244_v38  ;;  %v263_v43 = vadd.f32 %v254_v41, %v243_v39 }
 0x147   : > { %269 = vst.msk [vmem:[#allocation3 + $0x21] sm:$0xff] %vm265_vm3, %v264_v42  ;;  %268 = vst.msk [vmem:[#allocation3 + $0x19] sm:$0xff] %vm265_vm3, %v263_v43 }
 0x148   : > { %275 = vst.msk [vmem:[#allocation3 + $0x23] sm:$0x40] %vm273_vm4, %v264_v42 }
 0x149   : > { %272 = vst.msk [vmem:[#allocation3 + $0x17] sm:$0x2] %vm270_vm5, %v263_v43 }
 0x14a   : > { %v277_v45 = vld [vmem:[#allocation3 + $0x8] sm:$0xff] }
 0x14b   : > { %v284_v46 = vld [vmem:[#allocation3 + $0x1] sm:$0xff]  ;;  %v281_v48 = vmul.f32 0.25022104, %v277_v45  ;;  %v285_v49 = vld [vmem:[#allocation3 + $0x9] sm:$0xff] }
 0x14c   : > { %v276_v44 = vld [vmem:[#allocation3] sm:$0xff]  ;;  %v288_v51 = vmul.f32 0.49955794, %v284_v46  ;;  %v289_v52 = vmul.f32 0.49955794, %v285_v49  ;;  %v297_v53 = vld [vmem:[#allocation3 + $0xa] sm:$0xff] }
 0x14d   : > { %v280_v47 = vmul.f32 0.25022104, %v276_v44  ;;  %v296_v50 = vld [vmem:[#allocation3 + $0x2] sm:$0xff]  ;;  %v301_v60 = vmul.f32 0.25022104, %v297_v53 }
 0x14e   : > { %v300_v54 = vmul.f32 0.25022104, %v296_v50  ;;  %v279_v56 = vld [vmem:[#allocation3 + $0x20] sm:$0xff]  ;;  %v293_v59 = vadd.f32 %v289_v52, %v281_v48 }
 0x14f   : > { %v286_v57 = vld [vmem:[#allocation3 + $0x19] sm:$0xff]  ;;  %v292_v58 = vadd.f32 %v288_v51, %v280_v47  ;;  %v283_v62 = vmul.f32 0.25022104, %v279_v56  ;;  %v287_v63 = vld [vmem:[#allocation3 + $0x21] sm:$0xff] }
 0x150   : > { %v278_v55 = vld [vmem:[#allocation3 + $0x18] sm:$0xff]  ;;  %v290_v1 = vmul.f32 0.49955794, %v286_v57  ;;  %v291_v2 = vmul.f32 0.49955794, %v287_v63  ;;  %v299_v3 = vld [vmem:[#allocation3 + $0x22] sm:$0xff]  ;;  %v305_v5 = vadd.f32 %v301_v60, %v293_v59 }
 0x151   : > { %v282_v61 = vmul.f32 0.25022104, %v278_v55  ;;  %v298_v0 = vld [vmem:[#allocation3 + $0x1a] sm:$0xff]  ;;  %v304_v4 = vadd.f32 %v300_v54, %v292_v58  ;;  %v303_v9 = vmul.f32 0.25022104, %v299_v3 }
 0x152   : > { %v295_v7 = vadd.f32 %v291_v2, %v283_v62  ;;  %v302_v8 = vmul.f32 0.25022104, %v298_v0  ;;  %309 = vst.msk [vmem:[%s135_s2 + $0x8] sm:$0xff] %vm265_vm3, %v305_v5 }
 0x153   : > { %v294_v6 = vadd.f32 %v290_v1, %v282_v61  ;;  %308 = vst.msk [vmem:[%s135_s2] sm:$0xff] %vm265_vm3, %v304_v4 }
 0x154   : > { %v307_v11 = vadd.f32 %v303_v9, %v295_v7 }
 0x155   : > { %v306_v10 = vadd.f32 %v302_v8, %v294_v6 }
 0x156   : > { %311 = vst.msk [vmem:[%s135_s2 + $0x18] sm:$0xff] %vm265_vm3, %v307_v11 }
 0x157   : > { %310 = vst.msk [vmem:[%s135_s2 + $0x10] sm:$0xff] %vm265_vm3, %v306_v10 }
 0x158   : > { %517 = shalt.err (!%p514_p1)
}
 0x159   : > { %s518_s21 = scalar_lea.hbm %s729_s5, 512  ;;  %s522_s26 = scalar_lea.hbm %s777_s1, 2048 }
 0x15a   : > { %p519_p3 = scmp.ne.s32.totalorder %s729_s5, %s518_s21  ;;  %p523_p0 = scmp.lt.u32.totalorder %s729_s5, %s777_s1 }
 0x15b   : > { %p524_p2 = scmp.lt.u32.totalorder %s522_s26, %s518_s21  ;;  %p526_p6 = scmp.lt.u32.totalorder %s518_s21, %s729_s5 }
 0x15c   : > { %p520_p4 = pnand %p519_p3, %p784_p10 }
 0x15d   : > { %p525_p7 = por %p524_p2, %p523_p0 }
 0x15e   : > { %p521_p5 = pneg %p520_p4 }
 0x15f   : > { %p527_p11 = por %p526_p6, %p525_p7 }
 0x161   : > { %p528_p12 = pnand %p527_p11, %p521_p5 }
 0x163   : > { %531 = shalt.err (!%p528_p12)
}
 0x164   : > { %s580_s27 = smov 128   ;;  %s581_s17 = smov 8  }
 0x165   : > { %422 = dma.vmem_to_hbm [thread:$0]  (%p784_p10), %s731_s3, 512, %s729_s5, %s313_s11, %s580_s27, %s580_s27, %s581_s17  }
 0x166 PF: > { %p433_p8 = scmp.ge.s32.totalorder %s570_s9, 2  ;;  %s342_s28 = sand.u32 1, %s558_s6  }
 0x167   : > { %p785_p9 = scmp.ne.s32.totalorder %s782_s19, 0  ;;  %s343_s29 = scalar_lea.sflag [#allocation6], %s342_s28 }
 0x169   : > { %p429_p13 = pnand %p433_p8, %p785_p9 }
 0x16b   : > { %553 = dma.done.wait (!%p429_p13), %s343_s29, 512  }
 0x16c   : > { %555 = vsyncadd (!%p429_p13), %s343_s29, 4294966784  ;;  %p14_p1 = scmp.ge.s32.totalorder %s617_s12, 6   ;;  %s786_s6 = smov %s562_s7 }
 0x16d   : > { %s787_s7 = smov %s566_s8  ;;  %s788_s8 = smov %s629_s15 }
 0x16e   : > { %s789_s9 = smov %s617_s12  ;;  %16 = sbr.rel (!%p14_p1) target bundleno = 5 (0x5), region = 69 }
 0x175   :  { %348 = vsyncpa [#allocation5], 1 }
 0x176   :  { %350 = vsyncpa [#allocation5 + $0x1], 1 }
 0x177   :  { %351 = vsyncpa [#allocation6], 1 }
 0x178   :  { %353 = vsyncpa [#allocation6 + $0x1], 1 }

</bundles_post_ra>
